<compile_context>
chip_gen: v7x
topology: tpu7x:2x2x1
jax: 0.10.0
libtpu: 0.0.40
codegen_flags: <defaults>
</compile_context>

<pallas_src>
import functools
import math

import jax
import jax.numpy as jnp
from jax.experimental import pallas as pl
from jax.experimental.pallas import tpu as pltpu


def _round_up(v, m):
    return (v + m - 1) // m * m


def _dense_kernel(x_ref, w_ref, b_ref, o_ref, acc_ref, *, activation, use_bias):
    """One (tm, tn) output tile, accumulated over the K grid axis."""
    k = pl.program_id(2)

    @pl.when(k == 0)
    def _():
        acc_ref[...] = jnp.zeros_like(acc_ref)

    acc_ref[...] += jnp.dot(x_ref[...], w_ref[...],
                            preferred_element_type=jnp.float32)

    @pl.when(k == pl.num_programs(2) - 1)
    def _():
        y = acc_ref[...]
        if use_bias:
            y = y + b_ref[...]          # (1, tn) broadcast over rows
        if activation is not None:
            y = activation(y)           # fused epilogue (VPU/EUP)
        o_ref[...] = y.astype(o_ref.dtype)


def dense_forward(x, weight, bias=None, activation=None,
                  *, tm=256, tn=256, tk=512):
    """Pallas TPU equivalent of Dense.forward: activation(x @ W^T + b).

    x:      (..., in_features)
    weight: (out_features, in_features)   -- PyTorch nn.Linear layout
    bias:   (out_features,) or None
    """
    *lead, K = x.shape
    N, K_w = weight.shape
    assert K == K_w, "in_features mismatch"
    M = math.prod(lead) if lead else 1

    x2 = x.reshape(M, K)
    wt = weight.T                        # (K, N): output dim is lane-dense

    # Tile sizes respecting the (8, 128) vreg tiling, clamped to problem size.
    tm = min(tm, _round_up(M, 8))
    tk = min(tk, _round_up(K, 128))
    tn = min(tn, _round_up(N, 128))
    Mp, Kp, Np = _round_up(M, tm), _round_up(K, tk), _round_up(N, tn)

    # Zero-pad so every block is full; padded K columns contribute 0 to the sum.
    x2 = jnp.pad(x2, ((0, Mp - M), (0, Kp - K)))
    wt = jnp.pad(wt, ((0, Kp - K), (0, Np - N)))
    use_bias = bias is not None
    b2 = (jnp.pad(bias, (0, Np - N)) if use_bias
          else jnp.zeros((Np,), x.dtype)).reshape(1, Np)

    grid = (Mp // tm, Np // tn, Kp // tk)
    kernel = functools.partial(_dense_kernel, activation=activation,
                               use_bias=use_bias)

    out = pl.pallas_call(
        kernel,
        out_shape=jax.ShapeDtypeStruct((Mp, Np), x.dtype),
        grid_spec=pltpu.PrefetchScalarGridSpec(
            num_scalar_prefetch=0,
            grid=grid,
            in_specs=[
                pl.BlockSpec((tm, tk), lambda i, j, k: (i, k)),   # x tile
                pl.BlockSpec((tk, tn), lambda i, j, k: (k, j)),   # W^T tile
                pl.BlockSpec((1, tn), lambda i, j, k: (0, j)),    # bias tile
            ],
            out_specs=pl.BlockSpec((tm, tn), lambda i, j, k: (i, j)),
            scratch_shapes=[pltpu.VMEM((tm, tn), jnp.float32)],   # f32 accumulator
        ),
        compiler_params=pltpu.CompilerParams(
            dimension_semantics=("parallel", "parallel", "arbitrary"),
            vmem_limit_bytes=64 << 20,
        ),
    )(x2, wt, b2)

    out = out[:M, :N]
    return out.reshape(*lead, N) if lead else out.reshape(N)


def dense_reference(x, weight, bias=None, activation=None):
    y = x @ weight.T
    if bias is not None:
        y = y + bias
    if activation is not None:
        y = activation(y)
    return y


if __name__ == "__main__":
    key = jax.random.PRNGKey(0)
    kx, kw1, kw2, kb = jax.random.split(key, 4)

    # Small shapes implied by the module: (batch=2, seq=8, in_features=16) -> 32
    B, S, IN, OUT = 2, 8, 16, 32
    x = jax.random.normal(kx, (B, S, IN), jnp.float32)

    # Case 1: Dense(IN, OUT) with module defaults (use_bias=False, activation=None),
    # init=True style weights (normal, std=0.01).
    w1 = 0.01 * jax.random.normal(kw1, (OUT, IN), jnp.float32)
    y1 = dense_forward(x, w1)

    # Case 2: Dense(IN, OUT, use_bias=True, activation=tanh) — fused epilogue.
    w2 = 0.01 * jax.random.normal(kw2, (OUT, IN), jnp.float32)
    b2 = jax.random.normal(kb, (OUT,), jnp.float32)
    y2 = dense_forward(x, w2, b2, activation=jnp.tanh)

    jax.block_until_ready((y1, y2))

    r1 = dense_reference(x, w1)
    r2 = dense_reference(x, w2, b2, activation=jnp.tanh)

    assert y1.shape == (B, S, OUT)
    assert y2.shape == (B, S, OUT)
    assert jnp.allclose(y1, r1, atol=1e-5, rtol=1e-5)
    assert jnp.allclose(y2, r2, atol=1e-5, rtol=1e-5)

    print("KERNEL_OK")
</pallas_src>

<mosaic_0001>
module attributes {stable_mosaic.version = 11 : i64} {
  func.func @_dense_kernel(%arg0: i32, %arg1: i32, %arg2: i32, %arg3: memref<16x128xf32, #tpu.memory_space<vmem>>, %arg4: memref<128x128xf32, #tpu.memory_space<vmem>>, %arg5: memref<1x128xf32, #tpu.memory_space<vmem>>, %arg6: memref<16x128xf32, #tpu.memory_space<vmem>>, %arg7: memref<16x128xf32, #tpu.memory_space<vmem>>) attributes {dimension_semantics = [#tpu.dimension_semantics<parallel>, #tpu.dimension_semantics<parallel>, #tpu.dimension_semantics<arbitrary>], iteration_bounds = array<i64: 1, 1, 1>, scalar_prefetch = 0 : i64, scratch_operands = 1 : i64, tpu.core_type = #tpu.core_type<tc>, window_params = [{transform_indices = @transform_0, window_bounds = array<i64: 16, 128>}, {transform_indices = @transform_1, window_bounds = array<i64: 128, 128>}, {transform_indices = @transform_2, window_bounds = array<i64: 1, 128>}, {transform_indices = @transform_3, window_bounds = array<i64: 16, 128>}]} {
    %c0_i32 = arith.constant 0 : i32
    %0 = arith.cmpi eq, %arg2, %c0_i32 : i32
    %1 = arith.extui %0 : i1 to i32
    %c0_i32_0 = arith.constant 0 : i32
    %2 = arith.cmpi ne, %1, %c0_i32_0 : i32
    scf.if %2 {
      %cst_10 = arith.constant 0.000000e+00 : f32
      %12 = vector.broadcast %cst_10 : f32 to vector<16x128xf32>
      %c0_11 = arith.constant 0 : index
      %c0_12 = arith.constant 0 : index
      %13 = vector.load %arg7[%c0_11, %c0_12] : memref<16x128xf32, #tpu.memory_space<vmem>>, vector<16x128xf32>
      tpu.vector_store %arg7[%c0_11, %c0_12], %12 {strides = array<i32>} : memref<16x128xf32, #tpu.memory_space<vmem>>, vector<16x128xf32>,
    } else {
    }
    %c0 = arith.constant 0 : index
    %c0_1 = arith.constant 0 : index
    %3 = vector.load %arg7[%c0, %c0_1] : memref<16x128xf32, #tpu.memory_space<vmem>>, vector<16x128xf32>
    %c0_2 = arith.constant 0 : index
    %c0_3 = arith.constant 0 : index
    %4 = vector.load %arg3[%c0_2, %c0_3] : memref<16x128xf32, #tpu.memory_space<vmem>>, vector<16x128xf32>
    %c0_4 = arith.constant 0 : index
    %c0_5 = arith.constant 0 : index
    %5 = vector.load %arg4[%c0_4, %c0_5] : memref<128x128xf32, #tpu.memory_space<vmem>>, vector<128x128xf32>
    %cst = arith.constant dense<0.000000e+00> : vector<16x128xf32>
    %6 = tpu.matmul %4, %5, %cst {dimension_numbers = #tpu.dot_dimension_numbers<[1], [0], [0], [1], [0, 0, 1, 1], [], []>} : vector<16x128xf32>, vector<128x128xf32>, vector<16x128xf32> -> vector<16x128xf32>
    %7 = arith.addf %3, %6 : vector<16x128xf32>
    %c0_6 = arith.constant 0 : index
    %c0_7 = arith.constant 0 : index
    %8 = vector.load %arg7[%c0_6, %c0_7] : memref<16x128xf32, #tpu.memory_space<vmem>>, vector<16x128xf32>
    tpu.vector_store %arg7[%c0_6, %c0_7], %7 {strides = array<i32>} : memref<16x128xf32, #tpu.memory_space<vmem>>, vector<16x128xf32>,
    %c0_i32_8 = arith.constant 0 : i32
    %9 = arith.cmpi eq, %arg2, %c0_i32_8 : i32
    %10 = arith.extui %9 : i1 to i32
    %c0_i32_9 = arith.constant 0 : i32
    %11 = arith.cmpi ne, %10, %c0_i32_9 : i32
    scf.if %11 {
      %c0_10 = arith.constant 0 : index
      %c0_11 = arith.constant 0 : index
      %12 = vector.load %arg7[%c0_10, %c0_11] : memref<16x128xf32, #tpu.memory_space<vmem>>, vector<16x128xf32>
      %c0_12 = arith.constant 0 : index
      %c0_13 = arith.constant 0 : index
      %13 = vector.load %arg6[%c0_12, %c0_13] : memref<16x128xf32, #tpu.memory_space<vmem>>, vector<16x128xf32>
      tpu.vector_store %arg6[%c0_12, %c0_13], %12 {strides = array<i32>} : memref<16x128xf32, #tpu.memory_space<vmem>>, vector<16x128xf32>,
    } else {
    }
    return
  }
  func.func @transform_0(%arg0: i32, %arg1: i32, %arg2: i32) -> (i32, i32) {
    %c0_i32 = arith.constant 0 : i32
    return %arg0, %arg2 : i32, i32
  }
  func.func @transform_1(%arg0: i32, %arg1: i32, %arg2: i32) -> (i32, i32) {
    %c0_i32 = arith.constant 0 : i32
    return %arg2, %arg1 : i32, i32
  }
  func.func @transform_2(%arg0: i32, %arg1: i32, %arg2: i32) -> (i32, i32) {
    %c0_i32 = arith.constant 0 : i32
    %c0_i32_0 = arith.constant 0 : i32
    return %c0_i32, %arg1 : i32, i32
  }
  func.func @transform_3(%arg0: i32, %arg1: i32, %arg2: i32) -> (i32, i32) {
    %c0_i32 = arith.constant 0 : i32
    return %arg0, %arg1 : i32, i32
  }
}

</mosaic_0001>

<bundles_post_ra>
// kernel: tpu_custom_call.1
= control target key start
LH: loop header
LB: loop body
LE: loop exit
PB: predicated region body
PF: predicated region fallthrough
CT: control target
= control target key end

     0   :  { %8 = vsyncpa [#allocation4], 0  ;;  %s459_s0 = inlined_call_operand.hbm [shape: f32[16,128], index: 0, kind: input, shape index: {}]   ;;  %s460_s1 = inlined_call_operand.hbm [shape: f32[128,128], index: 1, kind: input, shape index: {}]   ;;  %s461_s2 = inlined_call_operand.hbm [shape: f32[1,128], index: 2, kind: input, shape index: {}]   ;;  %s462_s3 = inlined_call_operand.hbm [shape: f32[16,128], index: 3, kind: output, shape index: {}]  }
   0x1   :  { %9 = vsyncpa [#allocation7], 0 }
   0x2   :  { %10 = vsyncpa [#allocation5], 0  ;;  %s369_s12 = smov [#allocation6]   ;;  %s370_s14 = smov [#allocation3]  }
   0x3   :  { %s28_s13 = sshll.u32 %s369_s12, 4  ;;  %s16_s15 = sshll.u32 %s370_s14, 4  ;;  %s29_s13 = int_to_ptr.vmem [resolvable:$true] %s28_s13  ;;  %s395_s15 = int_to_ptr.vmem [resolvable:$true] %s16_s15 }
   0x4   :  { %s275_s18 = scalar_lea.hbm %s460_s1, 2048 }
   0x5   :  { %p276_p0 = scmp.ne.s32.totalorder %s460_s1, %s275_s18  ;;  %p279_p1 = scmp.lt.u32.totalorder %s275_s18, %s460_s1 }
   0x7   :  { %p281_p2 = pnand %p279_p1, %p276_p0 }
   0x9   :  { %284 = shalt.err (!%p281_p2)
}
   0xa   :  { %s285_s23 = scalar_lea.vmem %s29_s13, 2048  ;;  %p290_p4 = scmp.lt.s32.totalorder %s29_s13, %s29_s13 }
   0xb   :  { %p286_p3 = scmp.ne.s32.totalorder %s29_s13, %s285_s23  ;;  %p291_p5 = scmp.lt.s32.totalorder %s285_s23, %s285_s23 }
   0xd   :  { %p292_p6 = por %p291_p5, %p290_p4 }
   0xf   :  { %p293_p7 = pnand %p292_p6, %p286_p3 }
  0x11   :  { %296 = shalt.err (!%p293_p7)
}
  0x12   :  { %s371_s24 = smov 128   ;;  %s372_s25 = smov 8  }
  0x13   :  { %34 = dma.hbm_to_vmem [thread:$0]  %s460_s1, 2048, %s29_s13, [#allocation7], %s371_s24, %s371_s24, %s372_s25  }
  0x14   :  { %s297_s30 = scalar_lea.hbm %s459_s0, 256 }
  0x15   :  { %p298_p8 = scmp.ne.s32.totalorder %s459_s0, %s297_s30  ;;  %p301_p9 = scmp.lt.u32.totalorder %s297_s30, %s459_s0 }
  0x17   :  { %p303_p10 = pnand %p301_p9, %p298_p8 }
  0x19   :  { %306 = shalt.err (!%p303_p10)
}
  0x1a   :  { %s307_s8 = scalar_lea.vmem %s395_s15, 256  ;;  %p312_p12 = scmp.lt.s32.totalorder %s395_s15, %s395_s15 }
  0x1b   :  { %p308_p11 = scmp.ne.s32.totalorder %s395_s15, %s307_s8  ;;  %p313_p13 = scmp.lt.s32.totalorder %s307_s8, %s307_s8 }
  0x1d   :  { %p314_p0 = por %p313_p13, %p312_p12 }
  0x1f   :  { %p315_p1 = pnand %p314_p0, %p308_p11 }
  0x21   :  { %318 = shalt.err (!%p315_p1)
}
  0x22   :  { %22 = dma.hbm_to_vmem [thread:$0]  %s459_s0, 256, %s395_s15, [#allocation4], %s371_s24, %s371_s24, %s372_s25  }
  0x23   :  { %s373_s10 = smov [#allocation8]   ;;  %s319_s14 = scalar_lea.hbm %s461_s2, 16 }
  0x24   :  { %s41_s11 = sshll.u32 %s373_s10, 4  ;;  %p320_p2 = scmp.ne.s32.totalorder %s461_s2, %s319_s14  ;;  %s42_s11 = int_to_ptr.vmem [resolvable:$true] %s41_s11 }
  0x25   :  { %p323_p3 = scmp.lt.u32.totalorder %s319_s14, %s461_s2 }
  0x27   :  { %p325_p4 = pnand %p323_p3, %p320_p2 }
  0x29   :  { %328 = shalt.err (!%p325_p4)
}
  0x2a   :  { %s329_s20 = scalar_lea.vmem %s42_s11, 16  ;;  %s333_s0 = scalar_lea.vmem %s42_s11, 32 }
  0x2b   :  { %p330_p5 = scmp.ne.s32.totalorder %s42_s11, %s329_s20  ;;  %p334_p6 = scmp.lt.s32.totalorder %s42_s11, %s42_s11 }
  0x2c   :  { %p335_p7 = scmp.lt.s32.totalorder %s333_s0, %s329_s20 }
  0x2e   :  { %p336_p8 = por %p335_p7, %p334_p6 }
  0x30   :  { %p337_p9 = pnand %p336_p8, %p330_p5 }
  0x32   :  { %340 = shalt.err (!%p337_p9)
}
  0x33   :  { %44 = dma.hbm_to_vmem [thread:$0]  %s461_s2, 16, %s42_s11, [#allocation7]  }
  0x34   :  { %363 = dma.done.wait [#allocation4], 256  }
  0x35   :  { %364 = vsyncadd [#allocation4], 4294967040 }
  0x36   :  { %365 = dma.done.wait [#allocation7], 2064  }
  0x37   :  { %366 = vsyncadd [#allocation7], 4294965232  ;;  %v64_v0 = vld [vmem:[#allocation6] sm:$0xff]  ;;  %v65_v1 = vld [vmem:[#allocation6 + $0x8] sm:$0xff]  ;;  %s374_s2 = smov [#allocation9]  }
  0x38   :  { %v66_v2 = vld [vmem:[#allocation6 + $0x10] sm:$0xff]  ;;  %v237_v3 = vpack.c.bf16 %v65_v1, %v64_v0  ;;  %v67_v4 = vld [vmem:[#allocation6 + $0x18] sm:$0xff]  ;;  %v68_v6 = vld [vmem:[#allocation6 + $0x20] sm:$0xff]  ;;  %s171_s22 = sshll.u32 %s374_s2, 4  ;;  %s172_s22 = int_to_ptr.vmem [resolvable:$true] %s171_s22 }
  0x39   :  { %v241_v5 = vpack.c.bf16 %v67_v4, %v66_v2  ;;  %v69_v7 = vld [vmem:[#allocation6 + $0x28] sm:$0xff]  ;;  %v62_v9 = vld [vmem:[#allocation3] sm:$0xff]  ;;  %v71_v11 = vld [vmem:[#allocation6 + $0x38] sm:$0xff]  ;;  %s341_s23 = scalar_lea.vmem %s172_s22, 256  ;;  %p346_p11 = scmp.lt.s32.totalorder %s172_s22, %s172_s22 }
  0x3a   :  { %238 = vmatprep.subr.bf16.mxu0 %v237_v3  ;;  %v245_v8 = vpack.c.bf16 %v69_v7, %v68_v6  ;;  %v70_v10 = vld [vmem:[#allocation6 + $0x30] sm:$0xff]  ;;  %234 = vmatprep.mubr.f32.mxu0 %v62_v9  ;;  %v72_v13 = vld [vmem:[#allocation6 + $0x40] sm:$0xff]  ;;  %v73_v14 = vld [vmem:[#allocation6 + $0x48] sm:$0xff]  ;;  %p342_p10 = scmp.ne.s32.totalorder %s172_s22, %s341_s23  ;;  %p347_p12 = scmp.lt.s32.totalorder %s341_s23, %s341_s23 }
  0x3b   :  { %240 = vmatpush3.bf16.msra.mxu0 %v237_v3  ;;  %v249_v12 = vpack.c.bf16 %v71_v11, %v70_v10  ;;  %v253_v15 = vpack.c.bf16 %v73_v14, %v72_v13  ;;  %v74_v16 = vld [vmem:[#allocation6 + $0x50] sm:$0xff]  ;;  %v75_v17 = vld [vmem:[#allocation6 + $0x58] sm:$0xff]  ;;  %v76_v19 = vld [vmem:[#allocation6 + $0x60] sm:$0xff] }
  0x3c   :  { %242 = vmatprep.subr.bf16.mxu0 %v241_v5  ;;  %v257_v18 = vpack.c.bf16 %v75_v17, %v74_v16  ;;  %v77_v20 = vld [vmem:[#allocation6 + $0x68] sm:$0xff]  ;;  %v78_v22 = vld [vmem:[#allocation6 + $0x70] sm:$0xff]  ;;  %v79_v23 = vld [vmem:[#allocation6 + $0x78] sm:$0xff]  ;;  %p348_p13 = por %p347_p12, %p346_p11 }
  0x3d   :  { %v261_v21 = vpack.c.bf16 %v77_v20, %v76_v19  ;;  %v265_v24 = vpack.c.bf16 %v79_v23, %v78_v22  ;;  %v63_v25 = vld [vmem:[#allocation3 + $0x8] sm:$0xff] }
  0x3e   :  { %p349_p0 = pnand %p348_p13, %p342_p10 }
  0x3f   :  { %244 = vmatpush3.bf16.msra.mxu0 %v241_v5 }
  0x40   :  { %246 = vmatprep.subr.bf16.mxu0 %v245_v8 }
  0x43   :  { %248 = vmatpush3.bf16.msra.mxu0 %v245_v8 }
  0x44   :  { %250 = vmatprep.subr.bf16.mxu0 %v249_v12 }
  0x47   :  { %252 = vmatpush3.bf16.msra.mxu0 %v249_v12 }
  0x48   :  { %254 = vmatprep.subr.bf16.mxu0 %v253_v15 }
  0x4b   :  { %256 = vmatpush3.bf16.msra.mxu0 %v253_v15 }
  0x4c   :  { %258 = vmatprep.subr.bf16.mxu0 %v257_v18 }
  0x4f   :  { %260 = vmatpush3.bf16.msra.mxu0 %v257_v18 }
  0x50   :  { %262 = vmatprep.subr.bf16.mxu0 %v261_v21 }
  0x53   :  { %264 = vmatpush3.bf16.msra.mxu0 %v261_v21 }
  0x54   :  { %266 = vmatprep.subr.bf16.mxu0 %v265_v24 }
  0x57   :  { %268 = vmatpush3.bf16.msra.mxu0 %v265_v24 }
  0x5a   :  { %235 = vmatmul.mubr.f32.vlgmr.msra.gmra.mrb[0].mxu0 %v63_v25 }
 0x12d   :  { %v236_v26 = vpop.f32.mrb[0].mxu0 }
 0x12e   :  { %165 = vst [vmem:[#allocation9 + $0x8] sm:$0xff] %v236_v26  ;;  %v146_v27 = vpop.f32.mrb[1].mxu0 }
 0x12f   :  { %164 = vst [vmem:[#allocation9] sm:$0xff] %v146_v27 }
 0x130   :  { %352 = shalt.err (!%p349_p0)
}
 0x131   :  { %s353_s28 = scalar_lea.hbm %s462_s3, 256 }
 0x132   :  { %p354_p1 = scmp.ne.s32.totalorder %s462_s3, %s353_s28  ;;  %p357_p2 = scmp.lt.u32.totalorder %s353_s28, %s462_s3 }
 0x134   :  { %p359_p3 = pnand %p357_p2, %p354_p1 }
 0x136   :  { %362 = shalt.err (!%p359_p3)
}
 0x137   :  { %177 = dma.vmem_to_hbm [thread:$0]  %s172_s22, 256, %s462_s3, [#allocation5], %s371_s24, %s371_s24, %s372_s25  }
 0x138   :  { %367 = dma.done.wait [#allocation5], 256  }
 0x139   :  { %368 = vsyncadd [#allocation5], 4294967040 }
 0x13a   :  { %181 = vsyncpa [#allocation4], 1 }
 0x13b   :  { %182 = vsyncpa [#allocation7], 1 }
 0x13c   :  { %183 = vsyncpa [#allocation5], 1 }

</bundles_post_ra>
